<compile_context>
chip_gen: v7x
topology: tpu7x:2x2x1
jax: 0.10.0
libtpu: 0.0.40
codegen_flags: <defaults>
</compile_context>

<pallas_src>
import functools
import math

import jax
import jax.numpy as jnp
from jax import lax
from jax.experimental import pallas as pl
from jax.experimental.pallas import tpu as pltpu

LN_EPS = 1e-5  # torch.nn.LayerNorm default


def _round_up(x, m):
    return (x + m - 1) // m * m


def _projector_kernel(x_ref, w1_ref, params_ref, w2_ref, o_ref, *, approx_gelu):
    # linear_1: x @ W1^T + b1  (W1 pre-transposed to [mm_hidden, hidden]; bf16 in, f32 acc)
    h = jnp.dot(x_ref[...], w1_ref[...], preferred_element_type=jnp.float32)

    params = params_ref[...]          # (4, hidden) f32: [b1; gamma; beta; b2]
    b1 = params[0:1, :]
    gamma = params[1:2, :]
    beta = params[2:3, :]
    b2 = params[3:4, :]

    h = h + b1

    # LayerNorm over the hidden axis: single pass of sum / sum-of-squares,
    # biased variance, eps=1e-5 (torch default).  Strictly row-wise, so padded
    # rows in a partial tile cannot contaminate real rows.
    inv_d = 1.0 / h.shape[-1]
    s1 = jnp.sum(h, axis=-1, keepdims=True)
    s2 = jnp.sum(h * h, axis=-1, keepdims=True)
    mean = s1 * inv_d
    var = s2 * inv_d - mean * mean
    hn = (h - mean) * lax.rsqrt(var + LN_EPS)
    hn = hn * gamma + beta

    # GELU
    if approx_gelu:
        # tanh approximation (EUP slot) -- tiny numeric diff vs torch's exact-erf default
        c = math.sqrt(2.0 / math.pi)
        g = 0.5 * hn * (1.0 + jnp.tanh(c * (hn + 0.044715 * hn * hn * hn)))
    else:
        g = 0.5 * hn * (1.0 + lax.erf(hn * (1.0 / math.sqrt(2.0))))

    # linear_2: g @ W2^T + b2  (cast g to the weight dtype so the MXU runs bf16)
    out = jnp.dot(g.astype(w2_ref.dtype), w2_ref[...], preferred_element_type=jnp.float32)
    out = out + b2
    o_ref[...] = out.astype(o_ref.dtype)


def _vmem_limit_bytes():
    # Explicit scoped-VMEM limit: ~85% of physical, capped at 112 MiB.
    # (v5e/v6e: ~108 MiB; v7x: ~54 MiB.)  Falls back to a conservative 48 MiB.
    try:
        cap = pltpu.get_tpu_info().vmem_capacity_bytes
        return min(int(cap * 0.85), 112 * 1024 * 1024)
    except Exception:
        return 48 * 1024 * 1024


@functools.partial(
    jax.jit,
    static_argnames=("tile_m", "compute_dtype", "out_dtype", "approx_gelu"),
)
def llava_projector(x, w1_t, b1, gamma, beta, w2_t, b2, *,
                    tile_m=256, compute_dtype=jnp.bfloat16, out_dtype=None,
                    approx_gelu=True):
    """x: [B, S, mm_hidden]; w1_t: [mm_hidden, hidden]; w2_t: [hidden, hidden]."""
    B, S, D_in = x.shape
    D_hid = w1_t.shape[1]
    N = B * S
    if out_dtype is None:
        out_dtype = x.dtype

    xf = x.reshape(N, D_in).astype(compute_dtype)
    w1c = w1_t.astype(compute_dtype)
    w2c = w2_t.astype(compute_dtype)
    # Fuse the four 1-row parameter vectors into one small VMEM operand.
    params = jnp.concatenate(
        [b1.reshape(1, D_hid), gamma.reshape(1, D_hid),
         beta.reshape(1, D_hid), b2.reshape(1, D_hid)], axis=0
    ).astype(jnp.float32)

    # Tile sizing: multiple of 8 sublanes, clamped for small inputs; pad the token
    # axis so the grid divides exactly (padded rows are dropped after the call).
    tm = _round_up(max(8, min(tile_m, _round_up(N, 8))), 8)
    n_pad = _round_up(N, tm)
    if n_pad != N:
        xf = jnp.pad(xf, ((0, n_pad - N), (0, 0)))

    grid = (n_pad // tm,)
    kernel = functools.partial(_projector_kernel, approx_gelu=approx_gelu)

    out = pl.pallas_call(
        kernel,
        out_shape=jax.ShapeDtypeStruct((n_pad, D_hid), out_dtype),
        grid_spec=pltpu.PrefetchScalarGridSpec(
            num_scalar_prefetch=0,
            grid=grid,
            in_specs=[
                pl.BlockSpec((tm, D_in), lambda i: (i, 0)),       # x token tile
                pl.BlockSpec((D_in, D_hid), lambda i: (0, 0)),    # W1^T, resident (bf16)
                pl.BlockSpec((4, D_hid), lambda i: (0, 0)),       # [b1; gamma; beta; b2]
                pl.BlockSpec((D_hid, D_hid), lambda i: (0, 0)),   # W2^T, resident (bf16)
            ],
            out_specs=pl.BlockSpec((tm, D_hid), lambda i: (i, 0)),
        ),
        compiler_params=pltpu.CompilerParams(
            dimension_semantics=("parallel",),   # token-tile axis shards across TCs (v7x)
            vmem_limit_bytes=_vmem_limit_bytes(),
        ),
    )(xf, w1c, params, w2c)
    # TODO(synk): at full LLaVA sizes on v7x, add a column-grid axis over W2 (BlockSpec
    # (D_hid, tn), index (0, j)) if even bf16-resident weights + activations exceed VMEM.
    return out[:N].reshape(B, S, D_hid)


def _reference(x, w1_t, b1, gamma, beta, w2_t, b2):
    # Pure f32, exact-erf GELU reference (torch semantics).
    h = jnp.einsum("bsd,dh->bsh", x, w1_t) + b1
    mean = jnp.mean(h, axis=-1, keepdims=True)
    var = jnp.mean((h - mean) ** 2, axis=-1, keepdims=True)
    hn = (h - mean) * lax.rsqrt(var + LN_EPS) * gamma + beta
    g = 0.5 * hn * (1.0 + lax.erf(hn / math.sqrt(2.0)))
    return jnp.einsum("bsh,hk->bsk", g, w2_t) + b2


if __name__ == "__main__":
    # Small synthetic shapes consistent with the module:
    #   mm_hidden_size_ -> 64, hidden_size_ -> 128, batch=2, seq (patch tokens)=8
    B, S = 2, 8
    MM_HIDDEN, HIDDEN = 64, 128

    key = jax.random.PRNGKey(0)
    kx, kw1, kb1, kw2, kb2 = jax.random.split(key, 5)

    x = jax.random.normal(kx, (B, S, MM_HIDDEN), dtype=jnp.float32)

    # PyTorch parameter shapes: W1 [hidden, mm_hidden], W2 [hidden, hidden], 1-D biases.
    w1 = jax.random.normal(kw1, (HIDDEN, MM_HIDDEN), dtype=jnp.float32) * 0.02
    b1 = jax.random.normal(kb1, (HIDDEN,), dtype=jnp.float32) * 0.02
    w2 = jax.random.normal(kw2, (HIDDEN, HIDDEN), dtype=jnp.float32) * 0.02
    b2 = jax.random.normal(kb2, (HIDDEN,), dtype=jnp.float32) * 0.02
    gamma = jnp.ones((HIDDEN,), dtype=jnp.float32)   # LayerNorm weight init
    beta = jnp.zeros((HIDDEN,), dtype=jnp.float32)   # LayerNorm bias init

    # Pre-transpose linear weights to [in, out] for the kernel's row-major matmuls.
    w1_t = w1.T
    w2_t = w2.T

    out = llava_projector(x, w1_t, b1, gamma, beta, w2_t, b2)
    out = jax.block_until_ready(out)

    ref = _reference(x, w1_t, b1, gamma, beta, w2_t, b2)
    assert out.shape == (B, S, HIDDEN)
    # bf16 MXU inputs + tanh-GELU vs the exact f32/erf reference -> slightly relaxed tol.
    assert jnp.allclose(out, ref, atol=2e-2, rtol=2e-2), "mismatch vs pure-JAX reference"

    print("KERNEL_OK")
</pallas_src>

<mosaic_0001>
module attributes {stable_mosaic.version = 11 : i64} {
  func.func @_projector_kernel(%arg0: i32, %arg1: memref<16x64xbf16, #tpu.memory_space<vmem>>, %arg2: memref<64x128xbf16, #tpu.memory_space<vmem>>, %arg3: memref<4x128xf32, #tpu.memory_space<vmem>>, %arg4: memref<128x128xbf16, #tpu.memory_space<vmem>>, %arg5: memref<16x128xf32, #tpu.memory_space<vmem>>) attributes {dimension_semantics = [#tpu.dimension_semantics<parallel>], iteration_bounds = array<i64: 1>, scalar_prefetch = 0 : i64, scratch_operands = 0 : i64, tpu.core_type = #tpu.core_type<tc>, window_params = [{transform_indices = @transform_0, window_bounds = array<i64: 16, 64>}, {pipeline_mode = #tpu.pipeline_mode<synchronous>, transform_indices = @transform_1, window_bounds = array<i64: 64, 128>}, {pipeline_mode = #tpu.pipeline_mode<synchronous>, transform_indices = @transform_2, window_bounds = array<i64: 4, 128>}, {pipeline_mode = #tpu.pipeline_mode<synchronous>, transform_indices = @transform_3, window_bounds = array<i64: 128, 128>}, {transform_indices = @transform_4, window_bounds = array<i64: 16, 128>}]} {
    %c0 = arith.constant 0 : index
    %c0_0 = arith.constant 0 : index
    %0 = vector.load %arg1[%c0, %c0_0] : memref<16x64xbf16, #tpu.memory_space<vmem>>, vector<16x64xbf16>
    %c0_1 = arith.constant 0 : index
    %c0_2 = arith.constant 0 : index
    %1 = vector.load %arg2[%c0_1, %c0_2] : memref<64x128xbf16, #tpu.memory_space<vmem>>, vector<64x128xbf16>
    %cst = arith.constant dense<0.000000e+00> : vector<16x128xf32>
    %2 = tpu.matmul %0, %1, %cst {dimension_numbers = #tpu.dot_dimension_numbers<[1], [0], [0], [1], [0, 0, 1, 1], [], []>} : vector<16x64xbf16>, vector<64x128xbf16>, vector<16x128xf32> -> vector<16x128xf32>
    %c0_3 = arith.constant 0 : index
    %c0_4 = arith.constant 0 : index
    %3 = vector.load %arg3[%c0_3, %c0_4] : memref<4x128xf32, #tpu.memory_space<vmem>>, vector<4x128xf32>
    %4 = vector.extract_strided_slice %3 {offsets = [0, 0], sizes = [1, 128], strides = [1, 1]} : vector<4x128xf32> to vector<1x128xf32>
    %5 = vector.extract_strided_slice %3 {offsets = [1, 0], sizes = [1, 128], strides = [1, 1]} : vector<4x128xf32> to vector<1x128xf32>
    %6 = vector.extract_strided_slice %3 {offsets = [2, 0], sizes = [1, 128], strides = [1, 1]} : vector<4x128xf32> to vector<1x128xf32>
    %7 = vector.extract_strided_slice %3 {offsets = [3, 0], sizes = [1, 128], strides = [1, 1]} : vector<4x128xf32> to vector<1x128xf32>
    %8 = vector.broadcast %4 : vector<1x128xf32> to vector<16x128xf32>
    %9 = arith.addf %2, %8 : vector<16x128xf32>
    %cst_5 = arith.constant dense<0.000000e+00> : vector<16xf32>
    %10 = vector.multi_reduction <add>, %9, %cst_5 [1] : vector<16x128xf32> to vector<16xf32>
    %11 = vector.shape_cast %10 : vector<16xf32> to vector<16x1xf32>
    %12 = arith.mulf %9, %9 : vector<16x128xf32>
    %cst_6 = arith.constant dense<0.000000e+00> : vector<16xf32>
    %13 = vector.multi_reduction <add>, %12, %cst_6 [1] : vector<16x128xf32> to vector<16xf32>
    %14 = vector.shape_cast %13 : vector<16xf32> to vector<16x1xf32>
    %cst_7 = arith.constant 7.812500e-03 : f32
    %15 = vector.broadcast %cst_7 : f32 to vector<16x1xf32>
    %16 = arith.mulf %11, %15 : vector<16x1xf32>
    %cst_8 = arith.constant 7.812500e-03 : f32
    %17 = vector.broadcast %cst_8 : f32 to vector<16x1xf32>
    %18 = arith.mulf %14, %17 : vector<16x1xf32>
    %19 = arith.mulf %16, %16 : vector<16x1xf32>
    %20 = arith.subf %18, %19 : vector<16x1xf32>
    %21 = vector.broadcast %16 : vector<16x1xf32> to vector<16x128xf32>
    %22 = arith.subf %9, %21 : vector<16x128xf32>
    %cst_9 = arith.constant 9.99999974E-6 : f32
    %23 = vector.broadcast %cst_9 : f32 to vector<16x1xf32>
    %24 = arith.addf %20, %23 : vector<16x1xf32>
    %25 = math.rsqrt %24 : vector<16x1xf32>
    %26 = vector.broadcast %25 : vector<16x1xf32> to vector<16x128xf32>
    %27 = arith.mulf %22, %26 : vector<16x128xf32>
    %28 = vector.broadcast %5 : vector<1x128xf32> to vector<16x128xf32>
    %29 = arith.mulf %27, %28 : vector<16x128xf32>
    %30 = vector.broadcast %6 : vector<1x128xf32> to vector<16x128xf32>
    %31 = arith.addf %29, %30 : vector<16x128xf32>
    %cst_10 = arith.constant 5.000000e-01 : f32
    %32 = vector.broadcast %cst_10 : f32 to vector<16x128xf32>
    %33 = arith.mulf %32, %31 : vector<16x128xf32>
    %cst_11 = arith.constant 4.471500e-02 : f32
    %34 = vector.broadcast %cst_11 : f32 to vector<16x128xf32>
    %35 = arith.mulf %34, %31 : vector<16x128xf32>
    %36 = arith.mulf %35, %31 : vector<16x128xf32>
    %37 = arith.mulf %36, %31 : vector<16x128xf32>
    %38 = arith.addf %31, %37 : vector<16x128xf32>
    %cst_12 = arith.constant 0.797884583 : f32
    %39 = vector.broadcast %cst_12 : f32 to vector<16x128xf32>
    %40 = arith.mulf %39, %38 : vector<16x128xf32>
    %41 = math.tanh %40 : vector<16x128xf32>
    %cst_13 = arith.constant 1.000000e+00 : f32
    %42 = vector.broadcast %cst_13 : f32 to vector<16x128xf32>
    %43 = arith.addf %42, %41 : vector<16x128xf32>
    %44 = arith.mulf %33, %43 : vector<16x128xf32>
    %45 = arith.truncf %44 : vector<16x128xf32> to vector<16x128xbf16>
    %c0_14 = arith.constant 0 : index
    %c0_15 = arith.constant 0 : index
    %46 = vector.load %arg4[%c0_14, %c0_15] : memref<128x128xbf16, #tpu.memory_space<vmem>>, vector<128x128xbf16>
    %cst_16 = arith.constant dense<0.000000e+00> : vector<16x128xf32>
    %47 = tpu.matmul %45, %46, %cst_16 {dimension_numbers = #tpu.dot_dimension_numbers<[1], [0], [0], [1], [0, 0, 1, 1], [], []>} : vector<16x128xbf16>, vector<128x128xbf16>, vector<16x128xf32> -> vector<16x128xf32>
    %48 = vector.broadcast %7 : vector<1x128xf32> to vector<16x128xf32>
    %49 = arith.addf %47, %48 : vector<16x128xf32>
    %c0_17 = arith.constant 0 : index
    %c0_18 = arith.constant 0 : index
    %50 = vector.load %arg5[%c0_17, %c0_18] : memref<16x128xf32, #tpu.memory_space<vmem>>, vector<16x128xf32>
    tpu.vector_store %arg5[%c0_17, %c0_18], %49 {strides = array<i32>} : memref<16x128xf32, #tpu.memory_space<vmem>>, vector<16x128xf32>,
    return
  }
  func.func @transform_0(%arg0: i32) -> (i32, i32) {
    %c0_i32 = arith.constant 0 : i32
    %c0_i32_0 = arith.constant 0 : i32
    return %arg0, %c0_i32 : i32, i32
  }
  func.func @transform_1(%arg0: i32) -> (i32, i32) {
    %c0_i32 = arith.constant 0 : i32
    %c0_i32_0 = arith.constant 0 : i32
    %c0_i32_1 = arith.constant 0 : i32
    return %c0_i32, %c0_i32_0 : i32, i32
  }
  func.func @transform_2(%arg0: i32) -> (i32, i32) {
    %c0_i32 = arith.constant 0 : i32
    %c0_i32_0 = arith.constant 0 : i32
    %c0_i32_1 = arith.constant 0 : i32
    return %c0_i32, %c0_i32_0 : i32, i32
  }
  func.func @transform_3(%arg0: i32) -> (i32, i32) {
    %c0_i32 = arith.constant 0 : i32
    %c0_i32_0 = arith.constant 0 : i32
    %c0_i32_1 = arith.constant 0 : i32
    return %c0_i32, %c0_i32_0 : i32, i32
  }
  func.func @transform_4(%arg0: i32) -> (i32, i32) {
    %c0_i32 = arith.constant 0 : i32
    %c0_i32_0 = arith.constant 0 : i32
    return %arg0, %c0_i32 : i32, i32
  }
}

</mosaic_0001>

<bundles_post_ra>
// kernel: llava_projector.1
= control target key start
LH: loop header
LB: loop body
LE: loop exit
PB: predicated region body
PF: predicated region fallthrough
CT: control target
= control target key end

     0   :  { %v402_v1 = vmov 0.0   ;;  %vm403_vm0 = vmmov 0   ;;  %s498_s0 = inlined_call_operand.vmem [shape: bf16[16,64], index: 0, kind: input, shape index: {}]   ;;  %s499_s1 = inlined_call_operand.vmem [shape: bf16[64,128], index: 1, kind: input, shape index: {}]   ;;  %s500_s2 = inlined_call_operand.vmem [shape: f32[4,128], index: 2, kind: input, shape index: {}]   ;;  %s501_s3 = inlined_call_operand.vmem [shape: bf16[128,128], index: 3, kind: input, shape index: {}]   ;;  %s502_s4 = inlined_call_operand.hbm [shape: f32[16,128], index: 4, kind: output, shape index: {}]  }
   0x1   :  { %v357_v0 = vld [vmem:[%s499_s1] sm:$0xff]   ;;  %320 = vmatprep.subr.bf16.mxu0 %v402_v1  ;;  %332 = vmatprep.subr.bf16.mxu1 %v402_v1  ;;  %v358_v2 = vld [vmem:[%s499_s1 + $0x8] sm:$0xff]   ;;  %v359_v3 = vld [vmem:[%s499_s1 + $0x10] sm:$0xff]  }
   0x2   :  { %321 = vmatpush3.bf16.msra.mxu0 %v357_v0  ;;  %328 = vmatprep.mubr.msk.bf16.mxu0 %vm403_vm0, %v402_v1  ;;  %v360_v4 = vld [vmem:[%s499_s1 + $0x18] sm:$0xff]  }
   0x3   :  { %322 = vmatprep.subr.bf16.mxu0 %v402_v1  ;;  %348 = vmatprep.mubr.msk.bf16.mxu1 %vm403_vm0, %v402_v1 }
   0x6   :  { %323 = vmatpush3.bf16.msra.mxu0 %v358_v2 }
   0x7   :  { %324 = vmatprep.subr.bf16.mxu0 %v402_v1 }
   0xa   :  { %325 = vmatpush3.bf16.msra.mxu0 %v359_v3 }
   0xb   :  { %326 = vmatprep.subr.bf16.mxu0 %v402_v1 }
   0xc   :  { %9 = vsyncpa [#allocation3], 0  ;;  %v361_v5 = vld [vmem:[%s498_s0] sm:$0xff]   ;;  %vm63_vm1 = vcmask 523264   ;;  %v30_v6 = vlaneseq  ;;  %v363_v20 = vld [vmem:[%s501_s3 + $0x8] sm:$0xff]  }
   0xd   :  { %v453_v9 = vld [vmem:[%s500_s2] sm:$0xf]  ;;  %v364_v21 = vld [vmem:[%s501_s3 + $0x10] sm:$0xff]   ;;  %v365_v22 = vld [vmem:[%s501_s3 + $0x18] sm:$0xff]  }
   0xe   :  { %327 = vmatpush3.bf16.msra.mxu0 %v360_v4  ;;  %v447_v7 = vshrl.u32 %v30_v6, 7  ;;  %v362_v19 = vld [vmem:[%s501_s3] sm:$0xff]   ;;  %v367_v24 = vld [vmem:[%s501_s3 + $0x28] sm:$0xff]   ;;  %v368_v25 = vld [vmem:[%s501_s3 + $0x30] sm:$0xff]  }
   0xf   :  { %333 = vmatpush3.bf16.msra.mxu1 %v362_v19  ;;  %v366_v23 = vld [vmem:[%s501_s3 + $0x20] sm:$0xff]   ;;  %v369_v26 = vld [vmem:[%s501_s3 + $0x38] sm:$0xff]   ;;  %s404_s3 = smov [#allocation2]  }
  0x10   :  { %v32_v8 = vsub.s32 0, %v447_v7  ;;  %334 = vmatprep.subr.bf16.mxu1 %v402_v1  ;;  %v136_v41 = vsub.s32 1, %v447_v7  ;;  %v142_v42 = vsub.s32 2, %v447_v7  ;;  %s281_s14 = sshll.u32 %s404_s3, 4  ;;  %s282_s14 = int_to_ptr.vmem [resolvable:$true] %s281_s14 }
  0x11   :  { %329 = vmatmul.mubr.msk.bf16.vlgmr.msra.gmra.mrb[0].mxu0 %vm63_vm1, %v361_v5  ;;  %s378_s15 = scalar_lea.vmem %s282_s14, 256  ;;  %p383_p1 = scmp.lt.s32.totalorder %s282_s14, %s282_s14 }
  0x12   :  { %v33_v10 = vrot.slane %v453_v9, %v32_v8  ;;  %v137_v43 = vrot.slane %v453_v9, %v136_v41  ;;  %v143_v46 = vrot.slane %v453_v9, %v142_v42  ;;  %p379_p0 = scmp.ne.s32.totalorder %s282_s14, %s378_s15  ;;  %p384_p2 = scmp.lt.s32.totalorder %s378_s15, %s378_s15 }
  0x13   :  { %335 = vmatpush3.bf16.msra.mxu1 %v363_v20 }
  0x14   :  { %336 = vmatprep.subr.bf16.mxu1 %v402_v1  ;;  %p385_p3 = por %p384_p2, %p383_p1 }
  0x16   :  { %p386_p4 = pnand %p385_p3, %p379_p0 }
  0x17   :  { %337 = vmatpush3.bf16.msra.mxu1 %v364_v21 }
  0x18   :  { %338 = vmatprep.subr.bf16.mxu1 %v402_v1 }
  0x1b   :  { %339 = vmatpush3.bf16.msra.mxu1 %v365_v22 }
  0x1c   :  { %340 = vmatprep.subr.bf16.mxu1 %v402_v1 }
  0x1f   :  { %341 = vmatpush3.bf16.msra.mxu1 %v366_v23 }
  0x20   :  { %342 = vmatprep.subr.bf16.mxu1 %v402_v1 }
  0x23   :  { %343 = vmatpush3.bf16.msra.mxu1 %v367_v24 }
  0x24   :  { %344 = vmatprep.subr.bf16.mxu1 %v402_v1 }
  0x27   :  { %345 = vmatpush3.bf16.msra.mxu1 %v368_v25 }
  0x28   :  { %346 = vmatprep.subr.bf16.mxu1 %v402_v1 }
  0x2b   :  { %347 = vmatpush3.bf16.msra.mxu1 %v369_v26 }
  0xe4   :  { %v101_v11 = vpop.f32.mrb[0].mxu0 }
  0xe5   :  { %v102_v12 = vadd.f32 %v101_v11, %v33_v10  ;;  %v330_v13 = vpop.f32.mrb[1].mxu0 }
  0xe6   :  { %v104_v14 = vpop.f32.mrb[2].mxu0 }
  0xe7   :  { %v105_v15 = vadd.f32 %v104_v14, %v33_v10  ;;  %108 = vadd.xlane.f32.xlu0 %v102_v12  ;;  %v331_v16 = vpop.f32.mrb[3].mxu0  ;;  %v112_v17 = vmul.f32 %v102_v12, %v102_v12 }
  0xe9   :  { %114 = vadd.xlane.f32.xlu1 %v112_v17  ;;  %v113_v18 = vmul.f32 %v105_v15, %v105_v15 }
  0xeb   :  { %110 = vadd.xlane.f32.xlu0 %v105_v15 }
  0xed   :  { %116 = vadd.xlane.f32.xlu1 %v113_v18 }
 0x174   :  { %v109_v27 = vpop.xlane.xlu0 %108 }
 0x175   :  { %v118_v28 = vmul.f32 0.0078125, %v109_v27 }
 0x176   :  { %v115_v29 = vpop.xlane.xlu1 %114 }
 0x177   :  { %v122_v30 = vmul.f32 %v118_v28, %v118_v28  ;;  %v120_v31 = vmul.f32 0.0078125, %v115_v29  ;;  %v126_v44 = vsub.f32 %v102_v12, %v118_v28  ;;  %v183_v12 = vsub.s32 3, %v447_v7 }
 0x178   :  { %v111_v32 = vpop.xlane.xlu0 %110 }
 0x179   :  { %v124_v33 = vsub.f32 %v120_v31, %v122_v30  ;;  %v119_v34 = vmul.f32 0.0078125, %v111_v32  ;;  %v184_v13 = vrot.slane %v453_v9, %v183_v12 }
 0x17a   :  { %v117_v35 = vpop.xlane.xlu1 %116 }
 0x17b   :  { %v128_v36 = vadd.f32 1e-05, %v124_v33  ;;  %v123_v37 = vmul.f32 %v119_v34, %v119_v34  ;;  %v121_v38 = vmul.f32 0.0078125, %v117_v35  ;;  %v127_v49 = vsub.f32 %v105_v15, %v119_v34 }
 0x17d   :  { %370 = vrsqrt.f32 %v128_v36  ;;  %v125_v39 = vsub.f32 %v121_v38, %v123_v37 }
 0x17f   :  { %v129_v40 = vadd.f32 1e-05, %v125_v39 }
 0x181   :  { %372 = vrsqrt.f32 %v129_v40 }
 0x187   :  { %v371_v45 = vpop.eup %370 }
 0x188   :  { %v132_v47 = vmul.f32 %v371_v45, %v126_v44 }
 0x18a   :  { %v138_v48 = vmul.f32 %v137_v43, %v132_v47 }
 0x18b   :  { %v373_v50 = vpop.eup %372 }
 0x18c   :  { %v144_v51 = vadd.f32 %v143_v46, %v138_v48  ;;  %v133_v52 = vmul.f32 %v373_v50, %v127_v49 }
 0x18e   :  { %v139_v53 = vmul.f32 %v137_v43, %v133_v52  ;;  %v148_v54 = vmul.f32 0.044715, %v144_v51  ;;  %v146_v4 = vmul.f32 0.5, %v144_v51 }
 0x190   :  { %v145_v55 = vadd.f32 %v143_v46, %v139_v53  ;;  %v150_v56 = vmul.f32 %v148_v54, %v144_v51 }
 0x192   :  { %v149_v57 = vmul.f32 0.044715, %v145_v55  ;;  %v152_v58 = vmul.f32 %v150_v56, %v144_v51  ;;  %v147_v5 = vmul.f32 0.5, %v145_v55 }
 0x194   :  { %v151_v59 = vmul.f32 %v149_v57, %v145_v55  ;;  %v154_v60 = vadd.f32 %v152_v58, %v144_v51 }
 0x196   :  { %v153_v61 = vmul.f32 %v151_v59, %v145_v55  ;;  %v156_v62 = vmul.f32 0.7978846, %v154_v60 }
 0x198   :  { %v155_v63 = vadd.f32 %v153_v61, %v145_v55  ;;  %374 = vtanh.f32 %v156_v62 }
 0x19a   :  { %v157_v0 = vmul.f32 0.7978846, %v155_v63 }
 0x19c   :  { %376 = vtanh.f32 %v157_v0 }
 0x1a2   :  { %v375_v1 = vpop.eup %374 }
 0x1a3   :  { %v160_v2 = vadd.f32 1.0, %v375_v1 }
 0x1a5   :  { %v162_v8 = vmul.f32 %v160_v2, %v146_v4 }
 0x1a6   :  { %v377_v3 = vpop.eup %376 }
 0x1a7   :  { %v161_v6 = vadd.f32 1.0, %v377_v3 }
 0x1a9   :  { %v163_v10 = vmul.f32 %v161_v6, %v147_v5 }
 0x1ab   :  { %v164_v11 = vpack.c.bf16 %v163_v10, %v162_v8 }
 0x1ad   :  { %349 = vmatmul.mubr.bf16.vlgmr.msra.gmra.mrb[0].mxu1 %v164_v11 }
 0x280   :  { %v267_v14 = vpop.f32.mrb[0].mxu1 }
 0x281   :  { %v268_v15 = vadd.f32 %v267_v14, %v184_v13  ;;  %v350_v16 = vpop.f32.mrb[1].mxu1 }
 0x282   :  { %v270_v17 = vpop.f32.mrb[2].mxu1 }
 0x283   :  { %274 = vst [vmem:[#allocation2] sm:$0xff] %v268_v15  ;;  %v271_v18 = vadd.f32 %v270_v17, %v184_v13  ;;  %v351_v19 = vpop.f32.mrb[3].mxu1 }
 0x285   :  { %275 = vst [vmem:[#allocation2 + $0x8] sm:$0xff] %v271_v18 }
 0x286   :  { %389 = shalt.err (!%p386_p4)
}
 0x287   :  { %s390_s18 = scalar_lea.hbm %s502_s4, 256 }
 0x288   :  { %p391_p5 = scmp.ne.s32.totalorder %s502_s4, %s390_s18  ;;  %p394_p6 = scmp.lt.u32.totalorder %s390_s18, %s502_s4 }
 0x28a   :  { %p396_p7 = pnand %p394_p6, %p391_p5 }
 0x28c   :  { %399 = shalt.err (!%p396_p7)
}
 0x28d   :  { %s405_s23 = smov 128   ;;  %s406_s24 = smov 8  }
 0x28e   :  { %287 = dma.vmem_to_hbm [thread:$0]  %s282_s14, 256, %s502_s4, [#allocation3], %s405_s23, %s405_s23, %s406_s24  }
 0x28f   :  { %400 = dma.done.wait [#allocation3], 256  }
 0x290   :  { %401 = vsyncadd [#allocation3], 4294967040 }
 0x291   :  { %291 = vsyncpa [#allocation3], 1 }

</bundles_post_ra>
